<compile_context>
chip_gen: v7x
topology: tpu7x:2x2x1
jax: 0.10.0
libtpu: 0.0.40
codegen_flags: <defaults>
</compile_context>

<pallas_src>
import functools

import jax
import jax.numpy as jnp
from jax.experimental import pallas as pl
from jax.experimental.pallas import tpu as pltpu

# Plain Python floats (become jaxpr literals inside the kernels). Do NOT turn
# these into jnp scalars: concrete jax Arrays closed over by a Pallas kernel are
# "captured constants" and pallas_call rejects them.
_NEG_BIG = -1e30
_VMEM_LIMIT = 48 * 1024 * 1024          # per-core scoped VMEM; fits v7x's 64 MiB/TC


def _round_up(n, m):
    return ((n + m - 1) // m) * m


def _project_kernel(x_ref, w_ref, attm_ref, xp_ref, al_ref):
    """xp = x @ W (bf16 operands, f32 acc, bf16 out); alphas = xp @ att_mat.

    att_mat is block-diagonal so a single MXU matmul yields every head's src and
    dst attention logits at once.
    """
    xp = jnp.dot(x_ref[...], w_ref[...], preferred_element_type=jnp.float32)
    xp_ref[...] = xp.astype(xp_ref.dtype)
    al_ref[...] = jnp.dot(xp, attm_ref[...], preferred_element_type=jnp.float32)


def _attention_kernel(cnt_ref, a_dst_ref, a_src_ref, xp_ref, adj_ref, bias_ref,
                      out_ref, m_ref, l_ref, acc_ref, *,
                      heads, out_channels, block_s, xp_resident):
    """Online-softmax GAT aggregation for one (dst tile, src tile) grid step.

    cnt_ref:   [grid_m*grid_s] int32 in SMEM (scalar-prefetched edge counts)
    a_dst_ref: [TM, H] f32      a_src_ref: [H, TS] f32
    xp_ref:    [n_pad or TS, H*C] bf16      adj_ref: [TM, TS] int8
    bias_ref:  [1, H*C] f32     out_ref:   [TM, H*C]
    scratch:   m/l [TM, H] f32, acc [TM, H*C] f32
    """
    i = pl.program_id(0)
    j = pl.program_id(1)
    n_j = pl.num_programs(1)
    C = out_channels

    @pl.when(j == 0)
    def _init():
        m_ref[...] = jnp.full_like(m_ref, _NEG_BIG)
        l_ref[...] = jnp.zeros_like(l_ref)
        acc_ref[...] = jnp.zeros_like(acc_ref)

    # Tile skipping: empty (dst, src) tiles skip the whole body.
    @pl.when(cnt_ref[i * n_j + j] > 0)
    def _body():
        msk = adj_ref[...] != 0                            # [TM, TS] bool (shared by heads)

        if xp_resident:
            s0 = pl.multiple_of(j * block_s, block_s)
            xp = xp_ref[pl.ds(s0, block_s), :]             # [TS, H*C] bf16 (VMEM-resident)
        else:
            xp = xp_ref[...]                               # [TS, H*C] bf16 (per-tile DMA)

        a_dst = a_dst_ref[...]                             # [TM, H]
        a_src = a_src_ref[...]                             # [H, TS]

        # Per-head loop: only one [TM, TS] f32 temporary live at a time (keeps
        # peak VMEM/vreg pressure bounded on v7x).  heads is small -> unrolled.
        for h in range(heads):
            lo = h * C
            e = a_dst[:, h:h + 1] + a_src[h:h + 1, :]      # [TM, TS]
            e = jnp.maximum(e, 0.2 * e)                    # leaky_relu(0.2)

            # Online softmax; max taken over *edges only* (exact PyG
            # normalization), non-edges removed multiplicatively so fully
            # masked rows never accumulate garbage.
            m_prev = m_ref[:, h:h + 1]                     # [TM, 1]
            m_new = jnp.maximum(
                m_prev,
                jnp.max(jnp.where(msk, e, _NEG_BIG), axis=-1, keepdims=True))
            alpha = jnp.exp(m_prev - m_new)                # [TM, 1]
            p = jnp.where(msk, jnp.exp(e - m_new), 0.0)    # [TM, TS]
            l_ref[:, h:h + 1] = (alpha * l_ref[:, h:h + 1]
                                 + jnp.sum(p, axis=-1, keepdims=True))
            m_ref[:, h:h + 1] = m_new

            # Aggregation on the MXU: bf16 operands, f32 accumulation.
            part = jnp.dot(p.astype(jnp.bfloat16), xp[:, lo:lo + C],
                           preferred_element_type=jnp.float32)
            acc_ref[:, lo:lo + C] = alpha * acc_ref[:, lo:lo + C] + part

    @pl.when(j == n_j - 1)
    def _finalize():
        for h in range(heads):
            lo = h * C
            inv = pl.reciprocal(jnp.maximum(l_ref[:, h:h + 1], 1e-30), approx=False)
            acc_ref[:, lo:lo + C] = acc_ref[:, lo:lo + C] * inv
        # single lane-dense [TM, H*C] store, bias added once
        out_ref[...] = (acc_ref[...] + bias_ref[...]).astype(out_ref.dtype)


def gat_conv(x, edge_index, W, att_src, att_dst, bias, *, heads, out_channels,
             block_m=128, block_s=512):
    """x: [N, nin] f32; edge_index: [2, E] int32 (row 0 = src, row 1 = dst)."""
    N, nin = x.shape
    HC = heads * out_channels

    # ---- tiling --------------------------------------------------------------
    n_pad = _round_up(N, 128)
    bs = min(block_s, n_pad)
    n_pad = _round_up(n_pad, bs)
    bm = min(block_m, bs)
    if n_pad // bm < 2:
        bm = n_pad // 2            # >= 2 dst tiles so "parallel" can span both v7x cores
    grid_m, grid_s = n_pad // bm, n_pad // bs

    # pass-1 row tile: pure streaming, use the biggest tile that divides n_pad
    bm1 = 128
    for cand in (1024, 512, 256, 128):
        if n_pad % cand == 0:
            bm1 = cand
            break

    # ---- host-side prep ------------------------------------------------------
    x_pad = jnp.zeros((n_pad, nin), jnp.bfloat16).at[:N, :].set(x.astype(jnp.bfloat16))
    w_bf16 = W.astype(jnp.bfloat16)

    # PyG GATConv default add_self_loops=True: one self loop per node. Dense int8
    # [dst, src] mask; padded rows/cols stay zero.
    # TODO(synk): duplicate edges collapse in the dense mask (PyG's edge-list softmax
    # counts each occurrence), and for large sparse graphs the O(N^2) mask should be
    # bit-packed (uint32, 32 src/lane) or replaced by a CSR-per-dst-tile layout.
    loops = jnp.arange(N, dtype=edge_index.dtype)
    src = jnp.concatenate([edge_index[0], loops])
    dst = jnp.concatenate([edge_index[1], loops])
    adj = jnp.zeros((n_pad, n_pad), jnp.int8).at[dst, src].set(1)

    # Per-(dst tile, src tile) edge counts -> scalar-prefetched into SMEM so empty
    # tiles skip all compute in pass 2.
    tile_id = (dst // bm) * grid_s + (src // bs)
    counts = jax.ops.segment_sum(jnp.ones(dst.shape, jnp.int32), tile_id,
                                 num_segments=grid_m * grid_s).astype(jnp.int32)

    # Block-diagonal attention matrix: alphas[:, h] = <xp_h, att_src[h]>,
    # alphas[:, H+h] = <xp_h, att_dst[h]>.
    rows = jnp.arange(HC)
    head_of_row = rows // out_channels
    att_mat = jnp.zeros((HC, 2 * heads), jnp.float32)
    att_mat = att_mat.at[rows, head_of_row].set(att_src.reshape(-1))
    att_mat = att_mat.at[rows, heads + head_of_row].set(att_dst.reshape(-1))

    # ---- pass 1: projection + attention logits, tiled over node rows ----------
    xp, alphas = pl.pallas_call(
        _project_kernel,
        out_shape=(jax.ShapeDtypeStruct((n_pad, HC), jnp.bfloat16),
                   jax.ShapeDtypeStruct((n_pad, 2 * heads), jnp.float32)),
        grid=(n_pad // bm1,),
        in_specs=[pl.BlockSpec((bm1, nin), lambda i: (i, 0)),
                  pl.BlockSpec((nin, HC), lambda i: (0, 0)),
                  pl.BlockSpec((HC, 2 * heads), lambda i: (0, 0))],
        out_specs=[pl.BlockSpec((bm1, HC), lambda i: (i, 0)),
                   pl.BlockSpec((bm1, 2 * heads), lambda i: (i, 0))],
        compiler_params=pltpu.CompilerParams(
            dimension_semantics=("parallel",),
            vmem_limit_bytes=_VMEM_LIMIT),
    )(x_pad, w_bf16, att_mat)

    # Lane-packed logit layouts (no lane-padded [H, bm, 1] buffers).
    a_dst = alphas[:, heads:]              # [n_pad, H]
    a_src_t = alphas[:, :heads].T          # [H, n_pad]  (lane-dense over nodes)

    # Keep xp fully VMEM-resident across dst tiles when it comfortably fits
    # (budget 2x for double buffering); otherwise stream per src tile.
    xp_resident = 2 * n_pad * HC * 2 <= 16 * 1024 * 1024
    if xp_resident:
        xp_spec = pl.BlockSpec((n_pad, HC), lambda i, j, cnt: (0, 0))
    else:
        xp_spec = pl.BlockSpec((bs, HC), lambda i, j, cnt: (j, 0))

    # ---- pass 2: tiled attention + aggregation --------------------------------
    kernel = functools.partial(_attention_kernel, heads=heads,
                               out_channels=out_channels, block_s=bs,
                               xp_resident=xp_resident)
    out_pad = pl.pallas_call(
        kernel,
        out_shape=jax.ShapeDtypeStruct((n_pad, HC), x.dtype),
        grid_spec=pltpu.PrefetchScalarGridSpec(
            num_scalar_prefetch=1,
            grid=(grid_m, grid_s),
            in_specs=[pl.BlockSpec((bm, heads), lambda i, j, cnt: (i, 0)),   # a_dst
                      pl.BlockSpec((heads, bs), lambda i, j, cnt: (0, j)),   # a_src
                      xp_spec,                                               # xp
                      pl.BlockSpec((bm, bs), lambda i, j, cnt: (i, j)),      # adj mask
                      pl.BlockSpec((1, HC), lambda i, j, cnt: (0, 0))],      # bias
            out_specs=pl.BlockSpec((bm, HC), lambda i, j, cnt: (i, 0)),
            scratch_shapes=[pltpu.VMEM((bm, heads), jnp.float32),   # running max m
                            pltpu.VMEM((bm, heads), jnp.float32),   # running sum l
                            pltpu.VMEM((bm, HC), jnp.float32)]),    # output accumulator
        compiler_params=pltpu.CompilerParams(
            dimension_semantics=("parallel", "arbitrary"),
            vmem_limit_bytes=_VMEM_LIMIT),
    )(counts, a_dst, a_src_t, xp, adj, bias.astype(jnp.float32))

    return out_pad[:N]


def _reference_gat(x, src, dst, W, att_src, att_dst, bias, heads, C):
    """Edge-list (scatter/segment) reference in plain JAX, PyG-style."""
    N = x.shape[0]
    loops = jnp.arange(N, dtype=src.dtype)
    src = jnp.concatenate([src, loops])
    dst = jnp.concatenate([dst, loops])
    xp = (x @ W).reshape(N, heads, C)
    a_s = jnp.sum(xp * att_src[None], axis=-1)        # [N, H]
    a_d = jnp.sum(xp * att_dst[None], axis=-1)        # [N, H]
    e = a_s[src] + a_d[dst]                           # [E, H]
    e = jnp.where(e > 0, e, 0.2 * e)
    emax = jax.ops.segment_max(e, dst, num_segments=N)
    p = jnp.exp(e - emax[dst])
    den = jax.ops.segment_sum(p, dst, num_segments=N)
    alpha = p / den[dst]
    out = jax.ops.segment_sum(alpha[:, :, None] * xp[src], dst, num_segments=N)
    return out.reshape(N, heads * C) + bias[None, :].reshape(1, heads * C)


if __name__ == "__main__":
    # Module config: GATConv(nin, nout, nhead) -> gnn.GATConv(nin, nout // nhead, heads=nhead)
    nin, nout, nhead = 16, 32, 2
    C = nout // nhead
    N = 16

    key = jax.random.PRNGKey(0)
    kx, kw, ks, kd, kb = jax.random.split(key, 5)

    x = jax.random.normal(kx, (N, nin), jnp.float32)

    # Deterministic synthetic parameters (glorot-ish scale); bias nonzero to exercise the add.
    W = jax.random.normal(kw, (nin, nhead * C), jnp.float32) * (2.0 / (nin + nhead * C)) ** 0.5
    att_src = jax.random.normal(ks, (nhead, C), jnp.float32) * (1.0 / C) ** 0.5
    att_dst = jax.random.normal(kd, (nhead, C), jnp.float32) * (1.0 / C) ** 0.5
    bias = jax.random.normal(kb, (1, nhead * C), jnp.float32) * 0.1

    # Deterministic graph: ring + skip-2 chords (unique edges, no self loops). E = 2N.
    i = jnp.arange(N, dtype=jnp.int32)
    src = jnp.concatenate([i, i])
    dst = jnp.concatenate([(i + 1) % N, (i + 2) % N])
    edge_index = jnp.stack([src, dst])                # [2, E]
    edge_attr = jnp.zeros((edge_index.shape[1], 4), jnp.float32)  # ignored by forward()
    del edge_attr

    out = gat_conv(x, edge_index, W, att_src, att_dst, bias,
                   heads=nhead, out_channels=C)
    out = jax.block_until_ready(out)
    assert out.shape == (N, nout) and out.dtype == jnp.float32

    ref = _reference_gat(x, edge_index[0], edge_index[1], W, att_src, att_dst,
                         bias[0], nhead, C)
    # bf16 projection + bf16 aggregation operands -> tolerance loosened vs pure f32.
    assert jnp.allclose(out, ref, atol=3e-2, rtol=3e-2), (
        f"max abs err {jnp.max(jnp.abs(out - ref))}")

    print("KERNEL_OK")
</pallas_src>

<mosaic_0001>
module attributes {stable_mosaic.version = 11 : i64} {
  func.func @_project_kernel(%arg0: i32, %arg1: memref<128x16xbf16, #tpu.memory_space<vmem>>, %arg2: memref<16x32xbf16, #tpu.memory_space<vmem>>, %arg3: memref<32x4xf32, #tpu.memory_space<vmem>>, %arg4: memref<128x32xbf16, #tpu.memory_space<vmem>>, %arg5: memref<128x4xf32, #tpu.memory_space<vmem>>) attributes {dimension_semantics = [#tpu.dimension_semantics<parallel>], iteration_bounds = array<i64: 1>, scalar_prefetch = 0 : i64, scratch_operands = 0 : i64, tpu.core_type = #tpu.core_type<tc>, window_params = [{transform_indices = @transform_0, window_bounds = array<i64: 128, 16>}, {pipeline_mode = #tpu.pipeline_mode<synchronous>, transform_indices = @transform_1, window_bounds = array<i64: 16, 32>}, {pipeline_mode = #tpu.pipeline_mode<synchronous>, transform_indices = @transform_2, window_bounds = array<i64: 32, 4>}, {transform_indices = @transform_3, window_bounds = array<i64: 128, 32>}, {transform_indices = @transform_4, window_bounds = array<i64: 128, 4>}]} {
    %c0 = arith.constant 0 : index
    %c0_0 = arith.constant 0 : index
    %0 = vector.load %arg1[%c0, %c0_0] : memref<128x16xbf16, #tpu.memory_space<vmem>>, vector<128x16xbf16>
    %c0_1 = arith.constant 0 : index
    %c0_2 = arith.constant 0 : index
    %1 = vector.load %arg2[%c0_1, %c0_2] : memref<16x32xbf16, #tpu.memory_space<vmem>>, vector<16x32xbf16>
    %cst = arith.constant dense<0.000000e+00> : vector<128x32xf32>
    %2 = tpu.matmul %0, %1, %cst {dimension_numbers = #tpu.dot_dimension_numbers<[1], [0], [0], [1], [0, 0, 1, 1], [], []>} : vector<128x16xbf16>, vector<16x32xbf16>, vector<128x32xf32> -> vector<128x32xf32>
    %3 = arith.truncf %2 : vector<128x32xf32> to vector<128x32xbf16>
    %c0_3 = arith.constant 0 : index
    %c0_4 = arith.constant 0 : index
    %4 = vector.load %arg4[%c0_3, %c0_4] : memref<128x32xbf16, #tpu.memory_space<vmem>>, vector<128x32xbf16>
    tpu.vector_store %arg4[%c0_3, %c0_4], %3 {strides = array<i32>} : memref<128x32xbf16, #tpu.memory_space<vmem>>, vector<128x32xbf16>,
    %c0_5 = arith.constant 0 : index
    %c0_6 = arith.constant 0 : index
    %5 = vector.load %arg3[%c0_5, %c0_6] : memref<32x4xf32, #tpu.memory_space<vmem>>, vector<32x4xf32>
    %cst_7 = arith.constant dense<0.000000e+00> : vector<128x4xf32>
    %6 = tpu.matmul %2, %5, %cst_7 {dimension_numbers = #tpu.dot_dimension_numbers<[1], [0], [0], [1], [0, 0, 1, 1], [], []>} : vector<128x32xf32>, vector<32x4xf32>, vector<128x4xf32> -> vector<128x4xf32>
    %c0_8 = arith.constant 0 : index
    %c0_9 = arith.constant 0 : index
    %7 = vector.load %arg5[%c0_8, %c0_9] : memref<128x4xf32, #tpu.memory_space<vmem>>, vector<128x4xf32>
    tpu.vector_store %arg5[%c0_8, %c0_9], %6 {strides = array<i32>} : memref<128x4xf32, #tpu.memory_space<vmem>>, vector<128x4xf32>,
    return
  }
  func.func @transform_0(%arg0: i32) -> (i32, i32) {
    %c0_i32 = arith.constant 0 : i32
    %c0_i32_0 = arith.constant 0 : i32
    return %arg0, %c0_i32 : i32, i32
  }
  func.func @transform_1(%arg0: i32) -> (i32, i32) {
    %c0_i32 = arith.constant 0 : i32
    %c0_i32_0 = arith.constant 0 : i32
    %c0_i32_1 = arith.constant 0 : i32
    return %c0_i32, %c0_i32_0 : i32, i32
  }
  func.func @transform_2(%arg0: i32) -> (i32, i32) {
    %c0_i32 = arith.constant 0 : i32
    %c0_i32_0 = arith.constant 0 : i32
    %c0_i32_1 = arith.constant 0 : i32
    return %c0_i32, %c0_i32_0 : i32, i32
  }
  func.func @transform_3(%arg0: i32) -> (i32, i32) {
    %c0_i32 = arith.constant 0 : i32
    %c0_i32_0 = arith.constant 0 : i32
    return %arg0, %c0_i32 : i32, i32
  }
  func.func @transform_4(%arg0: i32) -> (i32, i32) {
    %c0_i32 = arith.constant 0 : i32
    %c0_i32_0 = arith.constant 0 : i32
    return %arg0, %c0_i32 : i32, i32
  }
}

</mosaic_0001>

<bundles_post_ra>
// kernel: tpu_custom_call.1
= control target key start
LH: loop header
LB: loop body
LE: loop exit
PB: predicated region body
PF: predicated region fallthrough
CT: control target
= control target key end

     0   :  { %vm81_vm0 = vcmask 130048   ;;  %vm288_vm1 = vcmask 261120   ;;  %vm267_vm2 = vcmask 257024   ;;  %vm482_vm3 = vcmask 31744   ;;  %s884_s1 = inlined_call_operand.vmem [shape: bf16[16,32], index: 1, kind: input, shape index: {}]   ;;  %s885_s0 = inlined_call_operand.vmem [shape: bf16[128,16], index: 0, kind: input, shape index: {}]   ;;  %s886_s2 = inlined_call_operand.vmem [shape: f32[32,4], index: 2, kind: input, shape index: {}]   ;;  %s887_s3 = inlined_call_operand.vmem [shape: bf16[128,32], index: 3, kind: output, shape index: {0}]   ;;  %s888_s4 = inlined_call_operand.vmem [shape: f32[128,4], index: 4, kind: output, shape index: {1}]  }
   0x1   :  { %v659_v0 = vld [vmem:[%s884_s1] sm:$0xff]   ;;  %v661_v2 = vld [vmem:[%s885_s0 + $0x8] sm:$0xff]   ;;  %v662_v3 = vld [vmem:[%s885_s0 + $0x10] sm:$0xff]  }
   0x2   :  { %v660_v1 = vld [vmem:[%s885_s0] sm:$0xff]   ;;  %601 = vmatprep.subr.bf16.mxu0 %v659_v0  ;;  %v285_v5 = vld [vmem:[%s886_s2 + $0x8] sm:$0xff]  ;;  %v663_v6 = vld [vmem:[%s885_s0 + $0x18] sm:$0xff]  }
   0x3   :  { %602 = vmatpush3.bf16.msra.mxu0 %v659_v0  ;;  %603 = vmatprep.mubr.msk.bf16.mxu0 %vm81_vm0, %v660_v1  ;;  %v284_v4 = vld [vmem:[%s886_s2] sm:$0xff]  ;;  %v665_v9 = vld [vmem:[%s885_s0 + $0x28] sm:$0xff]   ;;  %v666_v10 = vld [vmem:[%s885_s0 + $0x30] sm:$0xff]  }
   0x4   :  { %v651_v7 = vpack.c.bf16 %v285_v5, %v284_v4  ;;  %v664_v8 = vld [vmem:[%s885_s0 + $0x20] sm:$0xff]   ;;  %v667_v11 = vld [vmem:[%s885_s0 + $0x38] sm:$0xff]   ;;  %v286_v12 = vld [vmem:[%s886_s2 + $0x10] sm:$0xff] }
   0x5   :  { %v287_v13 = vld [vmem:[%s886_s2 + $0x18] sm:$0xff] }
   0x6   :  { %604 = vmatmul.mubr.msk.bf16.vlgmr.msra.gmra.mrb[0].mxu0 %vm81_vm0, %v661_v2  ;;  %652 = vmatprep.subr.bf16.mxu1 %v651_v7  ;;  %v655_v14 = vpack.c.bf16 %v287_v13, %v286_v12 }
   0x7   :  { %607 = vmatprep.mubr.msk.bf16.mxu0 %vm81_vm0, %v662_v3  ;;  %654 = vmatpush3.bf16.msra.mxu1 %v651_v7 }
   0x8   :  { %656 = vmatprep.subr.bf16.mxu1 %v655_v14 }
   0xb   :  { %658 = vmatpush3.bf16.msra.mxu1 %v655_v14 }
   0xe   :  { %608 = vmatmul.mubr.msk.bf16.gmra.mrb[4].mxu0 %vm81_vm0, %v663_v6 }
   0xf   :  { %611 = vmatprep.mubr.msk.bf16.mxu0 %vm81_vm0, %v664_v8 }
  0x16   :  { %612 = vmatmul.mubr.msk.bf16.gmra.mrb[8].mxu0 %vm81_vm0, %v665_v9 }
  0x17   :  { %615 = vmatprep.mubr.msk.bf16.mxu0 %vm81_vm0, %v666_v10 }
  0x1e   :  { %616 = vmatmul.mubr.msk.bf16.gmra.mrb[12].mxu0 %vm81_vm0, %v667_v11 }
  0xd9   :  { %v605_v15 = vpop.f32.mrb[0].mxu0 }
  0xda   :  { %v558_v16 = vpack.c.bf16 %v605_v15, %v605_v15  ;;  %v140_v17 = vpop.f32.mrb[1].mxu0 }
  0xdb   :  { %v556_v18 = vpack.c.bf16 %v140_v17, %v140_v17  ;;  %v606_v19 = vpop.f32.mrb[2].mxu0  ;;  %627 = vmatprep.mubr.msk.f32.mxu1 %vm288_vm1, %v140_v17 }
  0xdc   :  { %270 = vst.msk [vmem:[%s887_s3 + $0x8] sm:$0xf] %vm267_vm2, %v558_v16  ;;  %v559_v20 = vpack.c.bf16 %v606_v19, %v606_v19  ;;  %v143_v21 = vpop.f32.mrb[3].mxu0 }
  0xdd   :  { %268 = vst.msk [vmem:[%s887_s3] sm:$0xf] %vm267_vm2, %v556_v18  ;;  %v557_v22 = vpack.c.bf16 %v143_v21, %v143_v21  ;;  %628 = vmatmul.mubr.msk.f32.vlgmr.msra.gmra.mrb[0].mxu1 %vm288_vm1, %v143_v21 }
  0xde   :  { %271 = vst.msk [vmem:[%s887_s3 + $0xc] sm:$0xf] %vm267_vm2, %v559_v20  ;;  %630 = vmatprep.mubr.msk.f32.mxu1 %vm288_vm1, %v605_v15 }
  0xdf   :  { %269 = vst.msk [vmem:[%s887_s3 + $0x4] sm:$0xf] %vm267_vm2, %v557_v22 }
  0xe1   :  { %v609_v23 = vpop.f32.mrb[4].mxu0  ;;  %631 = vmatmul.mubr.msk.f32.gmra.mrb[2].mxu1 %vm288_vm1, %v606_v19 }
  0xe2   :  { %v562_v24 = vpack.c.bf16 %v609_v23, %v609_v23  ;;  %v156_v25 = vpop.f32.mrb[5].mxu0 }
  0xe3   :  { %v560_v26 = vpack.c.bf16 %v156_v25, %v156_v25  ;;  %v610_v27 = vpop.f32.mrb[6].mxu0  ;;  %633 = vmatprep.mubr.msk.f32.mxu1 %vm288_vm1, %v156_v25 }
  0xe4   :  { %274 = vst.msk [vmem:[%s887_s3 + $0x18] sm:$0xf] %vm267_vm2, %v562_v24  ;;  %v563_v28 = vpack.c.bf16 %v610_v27, %v610_v27  ;;  %v159_v29 = vpop.f32.mrb[7].mxu0 }
  0xe5   :  { %272 = vst.msk [vmem:[%s887_s3 + $0x10] sm:$0xf] %vm267_vm2, %v560_v26  ;;  %v561_v30 = vpack.c.bf16 %v159_v29, %v159_v29  ;;  %634 = vmatmul.mubr.msk.f32.gmra.mrb[4].mxu1 %vm288_vm1, %v159_v29 }
  0xe6   :  { %275 = vst.msk [vmem:[%s887_s3 + $0x1c] sm:$0xf] %vm267_vm2, %v563_v28  ;;  %636 = vmatprep.mubr.msk.f32.mxu1 %vm288_vm1, %v609_v23 }
  0xe7   :  { %273 = vst.msk [vmem:[%s887_s3 + $0x14] sm:$0xf] %vm267_vm2, %v561_v30 }
  0xe9   :  { %v613_v31 = vpop.f32.mrb[8].mxu0  ;;  %637 = vmatmul.mubr.msk.f32.gmra.mrb[6].mxu1 %vm288_vm1, %v610_v27 }
  0xea   :  { %v566_v32 = vpack.c.bf16 %v613_v31, %v613_v31  ;;  %v172_v33 = vpop.f32.mrb[9].mxu0 }
  0xeb   :  { %v564_v34 = vpack.c.bf16 %v172_v33, %v172_v33  ;;  %v614_v35 = vpop.f32.mrb[10].mxu0  ;;  %639 = vmatprep.mubr.msk.f32.mxu1 %vm288_vm1, %v172_v33 }
  0xec   :  { %278 = vst.msk [vmem:[%s887_s3 + $0x28] sm:$0xf] %vm267_vm2, %v566_v32  ;;  %v567_v36 = vpack.c.bf16 %v614_v35, %v614_v35  ;;  %v175_v37 = vpop.f32.mrb[11].mxu0 }
  0xed   :  { %276 = vst.msk [vmem:[%s887_s3 + $0x20] sm:$0xf] %vm267_vm2, %v564_v34  ;;  %v565_v38 = vpack.c.bf16 %v175_v37, %v175_v37  ;;  %640 = vmatmul.mubr.msk.f32.gmra.mrb[8].mxu1 %vm288_vm1, %v175_v37 }
  0xee   :  { %279 = vst.msk [vmem:[%s887_s3 + $0x2c] sm:$0xf] %vm267_vm2, %v567_v36  ;;  %642 = vmatprep.mubr.msk.f32.mxu1 %vm288_vm1, %v613_v31 }
  0xef   :  { %277 = vst.msk [vmem:[%s887_s3 + $0x24] sm:$0xf] %vm267_vm2, %v565_v38 }
  0xf1   :  { %v617_v39 = vpop.f32.mrb[12].mxu0  ;;  %643 = vmatmul.mubr.msk.f32.gmra.mrb[10].mxu1 %vm288_vm1, %v614_v35 }
  0xf2   :  { %v570_v40 = vpack.c.bf16 %v617_v39, %v617_v39  ;;  %v188_v41 = vpop.f32.mrb[13].mxu0 }
  0xf3   :  { %v568_v42 = vpack.c.bf16 %v188_v41, %v188_v41  ;;  %v618_v43 = vpop.f32.mrb[14].mxu0  ;;  %645 = vmatprep.mubr.msk.f32.mxu1 %vm288_vm1, %v188_v41 }
  0xf4   :  { %282 = vst.msk [vmem:[%s887_s3 + $0x38] sm:$0xf] %vm267_vm2, %v570_v40  ;;  %v571_v44 = vpack.c.bf16 %v618_v43, %v618_v43  ;;  %v191_v45 = vpop.f32.mrb[15].mxu0 }
  0xf5   :  { %280 = vst.msk [vmem:[%s887_s3 + $0x30] sm:$0xf] %vm267_vm2, %v568_v42  ;;  %v569_v46 = vpack.c.bf16 %v191_v45, %v191_v45  ;;  %646 = vmatmul.mubr.msk.f32.gmra.mrb[12].mxu1 %vm288_vm1, %v191_v45 }
  0xf6   :  { %283 = vst.msk [vmem:[%s887_s3 + $0x3c] sm:$0xf] %vm267_vm2, %v571_v44  ;;  %648 = vmatprep.mubr.msk.f32.mxu1 %vm288_vm1, %v617_v39 }
  0xf7   :  { %281 = vst.msk [vmem:[%s887_s3 + $0x34] sm:$0xf] %vm267_vm2, %v569_v46 }
  0xf9   :  { %649 = vmatmul.mubr.msk.f32.gmra.mrb[14].mxu1 %vm288_vm1, %v618_v43 }
 0x1b0   :  { %v629_v47 = vpop.f32.mrb[0].mxu1 }
 0x1b1   :  { %484 = vst.msk [vmem:[%s888_s4 + $0x8] sm:$0xff] %vm482_vm3, %v629_v47  ;;  %v403_v48 = vpop.f32.mrb[1].mxu1 }
 0x1b2   :  { %483 = vst.msk [vmem:[%s888_s4] sm:$0xff] %vm482_vm3, %v403_v48 }
 0x1b4   :  { %v632_v49 = vpop.f32.mrb[2].mxu1 }
 0x1b5   :  { %486 = vst.msk [vmem:[%s888_s4 + $0x18] sm:$0xff] %vm482_vm3, %v632_v49  ;;  %v413_v50 = vpop.f32.mrb[3].mxu1 }
 0x1b6   :  { %485 = vst.msk [vmem:[%s888_s4 + $0x10] sm:$0xff] %vm482_vm3, %v413_v50 }
 0x1b8   :  { %v635_v51 = vpop.f32.mrb[4].mxu1 }
 0x1b9   :  { %488 = vst.msk [vmem:[%s888_s4 + $0x28] sm:$0xff] %vm482_vm3, %v635_v51  ;;  %v423_v52 = vpop.f32.mrb[5].mxu1 }
 0x1ba   :  { %487 = vst.msk [vmem:[%s888_s4 + $0x20] sm:$0xff] %vm482_vm3, %v423_v52 }
 0x1bc   :  { %v638_v53 = vpop.f32.mrb[6].mxu1 }
 0x1bd   :  { %490 = vst.msk [vmem:[%s888_s4 + $0x38] sm:$0xff] %vm482_vm3, %v638_v53  ;;  %v433_v54 = vpop.f32.mrb[7].mxu1 }
 0x1be   :  { %489 = vst.msk [vmem:[%s888_s4 + $0x30] sm:$0xff] %vm482_vm3, %v433_v54 }
 0x1c0   :  { %v641_v55 = vpop.f32.mrb[8].mxu1 }
 0x1c1   :  { %492 = vst.msk [vmem:[%s888_s4 + $0x48] sm:$0xff] %vm482_vm3, %v641_v55  ;;  %v443_v56 = vpop.f32.mrb[9].mxu1 }
 0x1c2   :  { %491 = vst.msk [vmem:[%s888_s4 + $0x40] sm:$0xff] %vm482_vm3, %v443_v56 }
 0x1c4   :  { %v644_v57 = vpop.f32.mrb[10].mxu1 }
 0x1c5   :  { %494 = vst.msk [vmem:[%s888_s4 + $0x58] sm:$0xff] %vm482_vm3, %v644_v57  ;;  %v453_v58 = vpop.f32.mrb[11].mxu1 }
 0x1c6   :  { %493 = vst.msk [vmem:[%s888_s4 + $0x50] sm:$0xff] %vm482_vm3, %v453_v58 }
 0x1c8   :  { %v647_v59 = vpop.f32.mrb[12].mxu1 }
 0x1c9   :  { %496 = vst.msk [vmem:[%s888_s4 + $0x68] sm:$0xff] %vm482_vm3, %v647_v59  ;;  %v463_v60 = vpop.f32.mrb[13].mxu1 }
 0x1ca   :  { %495 = vst.msk [vmem:[%s888_s4 + $0x60] sm:$0xff] %vm482_vm3, %v463_v60 }
 0x1cc   :  { %v650_v61 = vpop.f32.mrb[14].mxu1 }
 0x1cd   :  { %498 = vst.msk [vmem:[%s888_s4 + $0x78] sm:$0xff] %vm482_vm3, %v650_v61  ;;  %v473_v62 = vpop.f32.mrb[15].mxu1 }
 0x1ce   :  { %497 = vst.msk [vmem:[%s888_s4 + $0x70] sm:$0xff] %vm482_vm3, %v473_v62 }

</bundles_post_ra>
